<compile_context>
chip_gen: v6e
topology: v6e:2x2x1
jax: 0.10.0
libtpu: 0.0.40
codegen_flags: <defaults>
</compile_context>

<pallas_src>
import functools
import math

import jax
import jax.numpy as jnp
from jax import lax
from jax.experimental import pallas as pl
from jax.experimental.pallas import tpu as pltpu

_EPS = 1e-5
_VMEM_LIMIT = 32 * 1024 * 1024   # fits v7x (64 MiB phys / 32 MiB scoped)


def _layernorm(x, g, b):
    mu = jnp.mean(x, axis=-1, keepdims=True)
    var = jnp.mean((x - mu) ** 2, axis=-1, keepdims=True)
    return (x - mu) * lax.rsqrt(var + _EPS) * g + b


# ----------------------------------------------------------------------------
# Single fused encoder kernel.  grid = (B, n_layers); residual stream is a
# VMEM scratch carried across the (innermost, "arbitrary") layer axis.
# ----------------------------------------------------------------------------
def _encoder_kernel(x_ref, m_ref, emb_w_ref, emb_b_ref,
                    ln1_g_ref, ln1_b_ref, win_ref, bin_ref,
                    wout_ref, bout_ref, ln2_g_ref, ln2_b_ref,
                    w1_ref, b1_ref, w2_ref, b2_ref,
                    lnf_g_ref, lnf_b_ref,
                    o_ref, h_ref, *, n_heads, scale):
    layer = pl.program_id(1)

    # --- embedding linear: only on the first layer step of each batch item ---
    @pl.when(layer == 0)
    def _():
        h_ref[0] = (jnp.dot(x_ref[0].astype(jnp.bfloat16), emb_w_ref[...],
                            preferred_element_type=jnp.float32)
                    + emb_b_ref[...])
        # NOTE: Dropout after the embedding Linear is identity (eval mode).

    h = h_ref[0]                                             # (L, H) f32 residual
    H = h.shape[-1]
    Dh = H // n_heads

    # --- attention sub-block: h = h + OutProj(MHA(LayerNorm(h))) ------------
    nx = _layernorm(h, ln1_g_ref[0], ln1_b_ref[0])           # (L, H)
    qkv = jnp.dot(nx.astype(jnp.bfloat16), win_ref[0],
                  preferred_element_type=jnp.float32) + bin_ref[0]   # (L, 3H)
    q, k, v = qkv[:, :H], qkv[:, H:2 * H], qkv[:, 2 * H:]

    madd = m_ref[0]                                          # (1, L) additive key mask
    heads = []
    for hd in range(n_heads):                                # static unroll, VMEM head slicing
        sl = slice(hd * Dh, (hd + 1) * Dh)
        qh = q[:, sl].astype(jnp.bfloat16)
        kh = k[:, sl].astype(jnp.bfloat16)
        vh = v[:, sl].astype(jnp.bfloat16)
        # q @ k^T without an explicit transpose (contract last dims of both).
        s = lax.dot_general(qh, kh, (((1,), (1,)), ((), ())),
                            preferred_element_type=jnp.float32) * scale
        s = s + madd
        s = s - jnp.max(s, axis=-1, keepdims=True)
        p = jnp.exp(s)
        p = p * pl.reciprocal(jnp.sum(p, axis=-1, keepdims=True), approx=True)
        heads.append(jnp.dot(p.astype(jnp.bfloat16), vh,
                             preferred_element_type=jnp.float32))    # (L, Dh)
    attn = jnp.concatenate(heads, axis=-1)                   # (L, H)
    proj = jnp.dot(attn.astype(jnp.bfloat16), wout_ref[0],
                   preferred_element_type=jnp.float32) + bout_ref[0]
    h = h + proj                                             # residual add

    # --- FFN sub-block: h = h + FF2(relu(FF1(LayerNorm(h)))) ----------------
    nx2 = _layernorm(h, ln2_g_ref[0], ln2_b_ref[0])
    f1 = jnp.maximum(
        jnp.dot(nx2.astype(jnp.bfloat16), w1_ref[0],
                preferred_element_type=jnp.float32) + b1_ref[0], 0.0)  # (L, F) stays in VMEM
    f2 = jnp.dot(f1.astype(jnp.bfloat16), w2_ref[0],
                 preferred_element_type=jnp.float32) + b2_ref[0]
    h = h + f2                                               # residual add

    h_ref[0] = h                                             # carry to next layer step

    # --- final LayerNorm: only on the last layer step ------------------------
    @pl.when(layer == pl.num_programs(1) - 1)
    def _():
        o_ref[0] = _layernorm(h, lnf_g_ref[...], lnf_b_ref[...]).astype(o_ref.dtype)


# ----------------------------------------------------------------------------
# Encoder forward (model glue): one pallas_call for the whole encoder.
# ----------------------------------------------------------------------------
def encoder_forward(x, params, e_mask, n_heads):
    """x: (L, B, emb_dim); e_mask: (B, L) bool, True = padding. -> (L, B, H)."""
    L, B, E = x.shape
    H = params["emb_w"].shape[1]
    F = params["layers"][0]["ff_w1"].shape[1]
    n_layers = len(params["layers"])
    scale = 1.0 / math.sqrt(H // n_heads)

    # Batch-major inside the kernel: one cheap transpose at each boundary.
    xb = jnp.transpose(x, (1, 0, 2))                                   # (B, L, E)
    # Additive key-padding mask, shared across heads (broadcast, no jnp.repeat).
    mask_add = jnp.where(e_mask, -1e9, 0.0).astype(jnp.float32).reshape(B, 1, L)

    def stack_w(name):   # (n_layers, in, out) bf16 MXU operands
        return jnp.stack([lp[name] for lp in params["layers"]]).astype(jnp.bfloat16)

    def stack_v(name):   # (n_layers, 1, dim) f32 biases / LN params
        a = jnp.stack([lp[name] for lp in params["layers"]])
        return a.reshape(n_layers, 1, a.shape[-1]).astype(jnp.float32)

    per_batch = lambda b, l: (b, 0, 0)
    per_layer = lambda b, l: (l, 0, 0)
    shared2 = lambda b, l: (0, 0)

    kern = functools.partial(_encoder_kernel, n_heads=n_heads, scale=scale)
    out = pl.pallas_call(
        kern,
        out_shape=jax.ShapeDtypeStruct((B, L, H), jnp.float32),
        grid=(B, n_layers),
        in_specs=[
            pl.BlockSpec((1, L, E), per_batch),            # x
            pl.BlockSpec((1, 1, L), per_batch),            # additive mask
            pl.BlockSpec((E, H), shared2),                 # emb_w (bf16)
            pl.BlockSpec((1, H), shared2),                 # emb_b
            pl.BlockSpec((1, 1, H), per_layer),            # ln1_g
            pl.BlockSpec((1, 1, H), per_layer),            # ln1_b
            pl.BlockSpec((1, H, 3 * H), per_layer),        # attn in-proj W (bf16)
            pl.BlockSpec((1, 1, 3 * H), per_layer),        # attn in-proj b
            pl.BlockSpec((1, H, H), per_layer),            # attn out-proj W (bf16)
            pl.BlockSpec((1, 1, H), per_layer),            # attn out-proj b
            pl.BlockSpec((1, 1, H), per_layer),            # ln2_g
            pl.BlockSpec((1, 1, H), per_layer),            # ln2_b
            pl.BlockSpec((1, H, F), per_layer),            # ff_w1 (bf16)
            pl.BlockSpec((1, 1, F), per_layer),            # ff_b1
            pl.BlockSpec((1, F, H), per_layer),            # ff_w2 (bf16)
            pl.BlockSpec((1, 1, H), per_layer),            # ff_b2
            pl.BlockSpec((1, H), shared2),                 # final norm g
            pl.BlockSpec((1, H), shared2),                 # final norm b
        ],
        out_specs=pl.BlockSpec((1, L, H), per_batch),
        scratch_shapes=[pltpu.VMEM((1, L, H), jnp.float32)],   # residual carry
        compiler_params=pltpu.CompilerParams(
            dimension_semantics=("parallel", "arbitrary"),
            vmem_limit_bytes=_VMEM_LIMIT),
    )(
        xb, mask_add,
        params["emb_w"].astype(jnp.bfloat16), params["emb_b"].reshape(1, H),
        stack_v("ln1_g"), stack_v("ln1_b"),
        stack_w("attn_in_w"), stack_v("attn_in_b"),
        stack_w("attn_out_w"), stack_v("attn_out_b"),
        stack_v("ln2_g"), stack_v("ln2_b"),
        stack_w("ff_w1"), stack_v("ff_b1"),
        stack_w("ff_w2"), stack_v("ff_b2"),
        params["norm_g"].reshape(1, H), params["norm_b"].reshape(1, H),
    )
    return out.transpose(1, 0, 2)                                      # (L, B, H)


# ----------------------------------------------------------------------------
# Deterministic parameter init (weights stored as (in, out), float32)
# ----------------------------------------------------------------------------
def init_params(key, emb_dim, hidden, ff_dim, n_layers):
    def nrm(k, shape, scale=0.05):
        return scale * jax.random.normal(k, shape, dtype=jnp.float32)

    keys = jax.random.split(key, 1 + n_layers)
    params = {
        "emb_w": nrm(jax.random.fold_in(keys[0], 0), (emb_dim, hidden)),
        "emb_b": nrm(jax.random.fold_in(keys[0], 1), (hidden,)),
        "norm_g": jnp.ones((hidden,), jnp.float32),
        "norm_b": jnp.zeros((hidden,), jnp.float32),
        "layers": [],
    }
    for li in range(n_layers):
        k = keys[1 + li]
        params["layers"].append({
            "attn_in_w": nrm(jax.random.fold_in(k, 0), (hidden, 3 * hidden)),
            "attn_in_b": nrm(jax.random.fold_in(k, 1), (3 * hidden,)),
            "attn_out_w": nrm(jax.random.fold_in(k, 2), (hidden, hidden)),
            "attn_out_b": nrm(jax.random.fold_in(k, 3), (hidden,)),
            "ln1_g": jnp.ones((hidden,), jnp.float32),
            "ln1_b": jnp.zeros((hidden,), jnp.float32),
            "ln2_g": jnp.ones((hidden,), jnp.float32),
            "ln2_b": jnp.zeros((hidden,), jnp.float32),
            "ff_w1": nrm(jax.random.fold_in(k, 4), (hidden, ff_dim)),
            "ff_b1": nrm(jax.random.fold_in(k, 5), (ff_dim,)),
            "ff_w2": nrm(jax.random.fold_in(k, 6), (ff_dim, hidden)),
            "ff_b2": nrm(jax.random.fold_in(k, 7), (hidden,)),
        })
    return params


# ----------------------------------------------------------------------------
# Pure-JAX reference (mirrors the bf16-operand / f32-accumulate recipe)
# ----------------------------------------------------------------------------
def ref_forward(x, params, e_mask, n_heads):
    L, B, E = x.shape
    H = params["emb_w"].shape[1]
    Dh = H // n_heads
    scale = 1.0 / math.sqrt(Dh)

    def mm(a, w):
        return jnp.dot(a.astype(jnp.bfloat16), w.astype(jnp.bfloat16),
                       preferred_element_type=jnp.float32)

    def ln(t, g, b):
        mu = t.mean(-1, keepdims=True)
        var = ((t - mu) ** 2).mean(-1, keepdims=True)
        return (t - mu) / jnp.sqrt(var + _EPS) * g + b

    h = mm(x, params["emb_w"]) + params["emb_b"]              # (L, B, H)
    madd = jnp.where(e_mask, -1e9, 0.0)[:, None, None, :]     # (B,1,1,L)
    for lp in params["layers"]:
        nx = ln(h, lp["ln1_g"], lp["ln1_b"])
        qkv = mm(nx, lp["attn_in_w"]) + lp["attn_in_b"]
        q, k, v = jnp.split(qkv, 3, axis=-1)

        def heads(t):
            return t.reshape(L, B, n_heads, Dh).transpose(1, 2, 0, 3)

        qh, kh, vh = heads(q), heads(k), heads(v)
        s = jnp.einsum("bhld,bhmd->bhlm", qh.astype(jnp.bfloat16),
                       kh.astype(jnp.bfloat16),
                       preferred_element_type=jnp.float32) * scale + madd
        p = jax.nn.softmax(s, axis=-1)
        a = jnp.einsum("bhlm,bhmd->bhld", p.astype(jnp.bfloat16),
                       vh.astype(jnp.bfloat16),
                       preferred_element_type=jnp.float32)
        a = a.transpose(2, 0, 1, 3).reshape(L, B, H)
        h = h + mm(a, lp["attn_out_w"]) + lp["attn_out_b"]

        nx = ln(h, lp["ln2_g"], lp["ln2_b"])
        f = mm(jnp.maximum(mm(nx, lp["ff_w1"]) + lp["ff_b1"], 0.0),
               lp["ff_w2"]) + lp["ff_b2"]
        h = h + f
    return ln(h, params["norm_g"], params["norm_b"])


# ----------------------------------------------------------------------------
if __name__ == "__main__":
    L, B = 8, 2              # seq, batch
    emb_dim, hidden = 24, 32
    ff_dim, n_heads, n_layers = 64, 4, 2

    key = jax.random.PRNGKey(0)
    kx, kp = jax.random.split(key)
    x = jax.random.normal(kx, (L, B, emb_dim), dtype=jnp.float32)
    e_mask = jnp.zeros((B, L), dtype=bool).at[1, -2:].set(True)  # pad last 2 keys of batch 1
    params = init_params(kp, emb_dim, hidden, ff_dim, n_layers)

    fwd = jax.jit(lambda xx, pp, msk: encoder_forward(xx, pp, msk, n_heads))
    out = jax.block_until_ready(fwd(x, params, e_mask))

    ref = ref_forward(x, params, e_mask, n_heads)
    assert out.shape == (L, B, hidden)
    assert bool(jnp.all(jnp.isfinite(out)))
    # Tolerance covers the approx-reciprocal softmax denominator; matmul
    # rounding matches because the reference uses the same bf16 operands.
    assert bool(jnp.allclose(out, ref, atol=1e-2, rtol=1e-2)), \
        float(jnp.max(jnp.abs(out - ref)))

    print("KERNEL_OK")
</pallas_src>

<mosaic_0001>
module attributes {stable_mosaic.version = 11 : i64} {
  func.func @_encoder_kernel(%arg0: i32, %arg1: i32, %arg2: memref<1x8x24xf32, #tpu.memory_space<vmem>>, %arg3: memref<1x1x8xf32, #tpu.memory_space<vmem>>, %arg4: memref<24x32xbf16, #tpu.memory_space<vmem>>, %arg5: memref<1x32xf32, #tpu.memory_space<vmem>>, %arg6: memref<1x1x32xf32, #tpu.memory_space<vmem>>, %arg7: memref<1x1x32xf32, #tpu.memory_space<vmem>>, %arg8: memref<1x32x96xbf16, #tpu.memory_space<vmem>>, %arg9: memref<1x1x96xf32, #tpu.memory_space<vmem>>, %arg10: memref<1x32x32xbf16, #tpu.memory_space<vmem>>, %arg11: memref<1x1x32xf32, #tpu.memory_space<vmem>>, %arg12: memref<1x1x32xf32, #tpu.memory_space<vmem>>, %arg13: memref<1x1x32xf32, #tpu.memory_space<vmem>>, %arg14: memref<1x32x64xbf16, #tpu.memory_space<vmem>>, %arg15: memref<1x1x64xf32, #tpu.memory_space<vmem>>, %arg16: memref<1x64x32xbf16, #tpu.memory_space<vmem>>, %arg17: memref<1x1x32xf32, #tpu.memory_space<vmem>>, %arg18: memref<1x32xf32, #tpu.memory_space<vmem>>, %arg19: memref<1x32xf32, #tpu.memory_space<vmem>>, %arg20: memref<1x8x32xf32, #tpu.memory_space<vmem>>, %arg21: memref<1x8x32xf32, #tpu.memory_space<vmem>>) attributes {dimension_semantics = [#tpu.dimension_semantics<parallel>, #tpu.dimension_semantics<arbitrary>], iteration_bounds = array<i64: 2, 2>, scalar_prefetch = 0 : i64, scratch_operands = 1 : i64, tpu.core_type = #tpu.core_type<tc>, window_params = [{transform_indices = @transform_0, window_bounds = array<i64: 1, 8, 24>}, {transform_indices = @transform_1, window_bounds = array<i64: 1, 1, 8>}, {pipeline_mode = #tpu.pipeline_mode<synchronous>, transform_indices = @transform_2, window_bounds = array<i64: 24, 32>}, {pipeline_mode = #tpu.pipeline_mode<synchronous>, transform_indices = @transform_3, window_bounds = array<i64: 1, 32>}, {transform_indices = @transform_4, window_bounds = array<i64: 1, 1, 32>}, {transform_indices = @transform_5, window_bounds = array<i64: 1, 1, 32>}, {transform_indices = @transform_6, window_bounds = array<i64: 1, 32, 96>}, {transform_indices = @transform_7, window_bounds = array<i64: 1, 1, 96>}, {transform_indices = @transform_8, window_bounds = array<i64: 1, 32, 32>}, {transform_indices = @transform_9, window_bounds = array<i64: 1, 1, 32>}, {transform_indices = @transform_10, window_bounds = array<i64: 1, 1, 32>}, {transform_indices = @transform_11, window_bounds = array<i64: 1, 1, 32>}, {transform_indices = @transform_12, window_bounds = array<i64: 1, 32, 64>}, {transform_indices = @transform_13, window_bounds = array<i64: 1, 1, 64>}, {transform_indices = @transform_14, window_bounds = array<i64: 1, 64, 32>}, {transform_indices = @transform_15, window_bounds = array<i64: 1, 1, 32>}, {pipeline_mode = #tpu.pipeline_mode<synchronous>, transform_indices = @transform_16, window_bounds = array<i64: 1, 32>}, {pipeline_mode = #tpu.pipeline_mode<synchronous>, transform_indices = @transform_17, window_bounds = array<i64: 1, 32>}, {transform_indices = @transform_18, window_bounds = array<i64: 1, 8, 32>}]} {
    %c0_i32 = arith.constant 0 : i32
    %0 = arith.cmpi eq, %arg1, %c0_i32 : i32
    %1 = arith.extui %0 : i1 to i32
    %c0_i32_0 = arith.constant 0 : i32
    %2 = arith.cmpi ne, %1, %c0_i32_0 : i32
    scf.if %2 {
      %c0_80 = arith.constant 0 : index
      %c0_81 = arith.constant 0 : index
      %c0_82 = arith.constant 0 : index
      %197 = vector.load %arg2[%c0_80, %c0_81, %c0_82] : memref<1x8x24xf32, #tpu.memory_space<vmem>>, vector<1x8x24xf32>
      %198 = vector.shape_cast %197 : vector<1x8x24xf32> to vector<8x24xf32>
      %199 = arith.truncf %198 : vector<8x24xf32> to vector<8x24xbf16>
      %c0_83 = arith.constant 0 : index
      %c0_84 = arith.constant 0 : index
      %200 = vector.load %arg4[%c0_83, %c0_84] : memref<24x32xbf16, #tpu.memory_space<vmem>>, vector<24x32xbf16>
      %cst_85 = arith.constant dense<0.000000e+00> : vector<8x32xf32>
      %201 = tpu.matmul %199, %200, %cst_85 {dimension_numbers = #tpu.dot_dimension_numbers<[1], [0], [0], [1], [0, 0, 1, 1], [], []>} : vector<8x24xbf16>, vector<24x32xbf16>, vector<8x32xf32> -> vector<8x32xf32>
      %c0_86 = arith.constant 0 : index
      %c0_87 = arith.constant 0 : index
      %202 = vector.load %arg5[%c0_86, %c0_87] : memref<1x32xf32, #tpu.memory_space<vmem>>, vector<1x32xf32>
      %203 = vector.broadcast %202 : vector<1x32xf32> to vector<8x32xf32>
      %204 = arith.addf %201, %203 : vector<8x32xf32>
      %c0_88 = arith.constant 0 : index
      %c0_89 = arith.constant 0 : index
      %c0_90 = arith.constant 0 : index
      %205 = vector.load %arg21[%c0_88, %c0_89, %c0_90] : memref<1x8x32xf32, #tpu.memory_space<vmem>>, vector<1x8x32xf32>
      %206 = vector.shape_cast %205 : vector<1x8x32xf32> to vector<8x32xf32>
      %207 = vector.shape_cast %204 : vector<8x32xf32> to vector<1x8x32xf32>
      tpu.vector_store %arg21[%c0_88, %c0_89, %c0_90], %207 {strides = array<i32>} : memref<1x8x32xf32, #tpu.memory_space<vmem>>, vector<1x8x32xf32>,
    } else {
    }
    %c0 = arith.constant 0 : index
    %c0_1 = arith.constant 0 : index
    %c0_2 = arith.constant 0 : index
    %3 = vector.load %arg21[%c0, %c0_1, %c0_2] : memref<1x8x32xf32, #tpu.memory_space<vmem>>, vector<1x8x32xf32>
    %4 = vector.shape_cast %3 : vector<1x8x32xf32> to vector<8x32xf32>
    %c0_3 = arith.constant 0 : index
    %c0_4 = arith.constant 0 : index
    %c0_5 = arith.constant 0 : index
    %5 = vector.load %arg6[%c0_3, %c0_4, %c0_5] : memref<1x1x32xf32, #tpu.memory_space<vmem>>, vector<1x1x32xf32>
    %6 = vector.shape_cast %5 : vector<1x1x32xf32> to vector<1x32xf32>
    %c0_6 = arith.constant 0 : index
    %c0_7 = arith.constant 0 : index
    %c0_8 = arith.constant 0 : index
    %7 = vector.load %arg7[%c0_6, %c0_7, %c0_8] : memref<1x1x32xf32, #tpu.memory_space<vmem>>, vector<1x1x32xf32>
    %8 = vector.shape_cast %7 : vector<1x1x32xf32> to vector<1x32xf32>
    %cst = arith.constant dense<0.000000e+00> : vector<8xf32>
    %9 = vector.multi_reduction <add>, %4, %cst [1] : vector<8x32xf32> to vector<8xf32>
    %10 = vector.shape_cast %9 : vector<8xf32> to vector<8x1xf32>
    %cst_9 = arith.constant 3.200000e+01 : f32
    %11 = vector.broadcast %cst_9 : f32 to vector<8x1xf32>
    %12 = arith.divf %10, %11 : vector<8x1xf32>
    %13 = vector.broadcast %12 : vector<8x1xf32> to vector<8x32xf32>
    %14 = arith.subf %4, %13 : vector<8x32xf32>
    %15 = arith.mulf %14, %14 : vector<8x32xf32>
    %cst_10 = arith.constant dense<0.000000e+00> : vector<8xf32>
    %16 = vector.multi_reduction <add>, %15, %cst_10 [1] : vector<8x32xf32> to vector<8xf32>
    %17 = vector.shape_cast %16 : vector<8xf32> to vector<8x1xf32>
    %cst_11 = arith.constant 3.200000e+01 : f32
    %18 = vector.broadcast %cst_11 : f32 to vector<8x1xf32>
    %19 = arith.divf %17, %18 : vector<8x1xf32>
    %20 = vector.broadcast %12 : vector<8x1xf32> to vector<8x32xf32>
    %21 = arith.subf %4, %20 : vector<8x32xf32>
    %cst_12 = arith.constant 9.99999974E-6 : f32
    %22 = vector.broadcast %cst_12 : f32 to vector<8x1xf32>
    %23 = arith.addf %19, %22 : vector<8x1xf32>
    %24 = math.rsqrt %23 : vector<8x1xf32>
    %25 = vector.broadcast %24 : vector<8x1xf32> to vector<8x32xf32>
    %26 = arith.mulf %21, %25 : vector<8x32xf32>
    %27 = vector.broadcast %6 : vector<1x32xf32> to vector<8x32xf32>
    %28 = arith.mulf %26, %27 : vector<8x32xf32>
    %29 = vector.broadcast %8 : vector<1x32xf32> to vector<8x32xf32>
    %30 = arith.addf %28, %29 : vector<8x32xf32>
    %31 = arith.truncf %30 : vector<8x32xf32> to vector<8x32xbf16>
    %c0_13 = arith.constant 0 : index
    %c0_14 = arith.constant 0 : index
    %c0_15 = arith.constant 0 : index
    %32 = vector.load %arg8[%c0_13, %c0_14, %c0_15] : memref<1x32x96xbf16, #tpu.memory_space<vmem>>, vector<1x32x96xbf16>
    %33 = vector.shape_cast %32 : vector<1x32x96xbf16> to vector<32x96xbf16>
    %cst_16 = arith.constant dense<0.000000e+00> : vector<8x96xf32>
    %34 = tpu.matmul %31, %33, %cst_16 {dimension_numbers = #tpu.dot_dimension_numbers<[1], [0], [0], [1], [0, 0, 1, 1], [], []>} : vector<8x32xbf16>, vector<32x96xbf16>, vector<8x96xf32> -> vector<8x96xf32>
    %c0_17 = arith.constant 0 : index
    %c0_18 = arith.constant 0 : index
    %c0_19 = arith.constant 0 : index
    %35 = vector.load %arg9[%c0_17, %c0_18, %c0_19] : memref<1x1x96xf32, #tpu.memory_space<vmem>>, vector<1x1x96xf32>
    %36 = vector.shape_cast %35 : vector<1x1x96xf32> to vector<1x96xf32>
    %37 = vector.broadcast %36 : vector<1x96xf32> to vector<8x96xf32>
    %38 = arith.addf %34, %37 : vector<8x96xf32>
    %39 = vector.extract_strided_slice %38 {offsets = [0, 0], sizes = [8, 32], strides = [1, 1]} : vector<8x96xf32> to vector<8x32xf32>
    %40 = vector.extract_strided_slice %38 {offsets = [0, 32], sizes = [8, 32], strides = [1, 1]} : vector<8x96xf32> to vector<8x32xf32>
    %41 = vector.extract_strided_slice %38 {offsets = [0, 64], sizes = [8, 32], strides = [1, 1]} : vector<8x96xf32> to vector<8x32xf32>
    %c0_20 = arith.constant 0 : index
    %c0_21 = arith.constant 0 : index
    %c0_22 = arith.constant 0 : index
    %42 = vector.load %arg3[%c0_20, %c0_21, %c0_22] : memref<1x1x8xf32, #tpu.memory_space<vmem>>, vector<1x1x8xf32>
    %43 = vector.shape_cast %42 : vector<1x1x8xf32> to vector<1x8xf32>
    %44 = vector.extract_strided_slice %39 {offsets = [0, 0], sizes = [8, 8], strides = [1, 1]} : vector<8x32xf32> to vector<8x8xf32>
    %45 = arith.truncf %44 : vector<8x8xf32> to vector<8x8xbf16>
    %46 = vector.extract_strided_slice %40 {offsets = [0, 0], sizes = [8, 8], strides = [1, 1]} : vector<8x32xf32> to vector<8x8xf32>
    %47 = arith.truncf %46 : vector<8x8xf32> to vector<8x8xbf16>
    %48 = vector.extract_strided_slice %41 {offsets = [0, 0], sizes = [8, 8], strides = [1, 1]} : vector<8x32xf32> to vector<8x8xf32>
    %49 = arith.truncf %48 : vector<8x8xf32> to vector<8x8xbf16>
    %cst_23 = arith.constant dense<0.000000e+00> : vector<8x8xf32>
    %50 = tpu.matmul %45, %47, %cst_23 {dimension_numbers = #tpu.dot_dimension_numbers<[1], [1], [0], [0], [0, 0, 1, 0], [], []>} : vector<8x8xbf16>, vector<8x8xbf16>, vector<8x8xf32> -> vector<8x8xf32>
    %cst_24 = arith.constant 0.353553385 : f32
    %51 = vector.broadcast %cst_24 : f32 to vector<8x8xf32>
    %52 = arith.mulf %50, %51 : vector<8x8xf32>
    %53 = vector.broadcast %43 : vector<1x8xf32> to vector<8x8xf32>
    %54 = arith.addf %52, %53 : vector<8x8xf32>
    %cst_25 = arith.constant dense<0xFF800000> : vector<8xf32>
    %55 = vector.multi_reduction <maximumf>, %54, %cst_25 [1] : vector<8x8xf32> to vector<8xf32>
    %56 = vector.shape_cast %55 : vector<8xf32> to vector<8x1xf32>
    %57 = vector.broadcast %56 : vector<8x1xf32> to vector<8x8xf32>
    %58 = arith.subf %54, %57 : vector<8x8xf32>
    %59 = math.exp %58 : vector<8x8xf32>
    %cst_26 = arith.constant dense<0.000000e+00> : vector<8xf32>
    %60 = vector.multi_reduction <add>, %59, %cst_26 [1] : vector<8x8xf32> to vector<8xf32>
    %61 = vector.shape_cast %60 : vector<8xf32> to vector<8x1xf32>
    %62 = tpu.reciprocal %61 {approx = true} : vector<8x1xf32> -> vector<8x1xf32>
    %63 = vector.broadcast %62 : vector<8x1xf32> to vector<8x8xf32>
    %64 = arith.mulf %59, %63 : vector<8x8xf32>
    %65 = arith.truncf %64 : vector<8x8xf32> to vector<8x8xbf16>
    %cst_27 = arith.constant dense<0.000000e+00> : vector<8x8xf32>
    %66 = tpu.matmul %65, %49, %cst_27 {dimension_numbers = #tpu.dot_dimension_numbers<[1], [0], [0], [1], [0, 0, 1, 1], [], []>} : vector<8x8xbf16>, vector<8x8xbf16>, vector<8x8xf32> -> vector<8x8xf32>
    %67 = vector.extract_strided_slice %39 {offsets = [0, 8], sizes = [8, 8], strides = [1, 1]} : vector<8x32xf32> to vector<8x8xf32>
    %68 = arith.truncf %67 : vector<8x8xf32> to vector<8x8xbf16>
    %69 = vector.extract_strided_slice %40 {offsets = [0, 8], sizes = [8, 8], strides = [1, 1]} : vector<8x32xf32> to vector<8x8xf32>
    %70 = arith.truncf %69 : vector<8x8xf32> to vector<8x8xbf16>
    %71 = vector.extract_strided_slice %41 {offsets = [0, 8], sizes = [8, 8], strides = [1, 1]} : vector<8x32xf32> to vector<8x8xf32>
    %72 = arith.truncf %71 : vector<8x8xf32> to vector<8x8xbf16>
    %cst_28 = arith.constant dense<0.000000e+00> : vector<8x8xf32>
    %73 = tpu.matmul %68, %70, %cst_28 {dimension_numbers = #tpu.dot_dimension_numbers<[1], [1], [0], [0], [0, 0, 1, 0], [], []>} : vector<8x8xbf16>, vector<8x8xbf16>, vector<8x8xf32> -> vector<8x8xf32>
    %cst_29 = arith.constant 0.353553385 : f32
    %74 = vector.broadcast %cst_29 : f32 to vector<8x8xf32>
    %75 = arith.mulf %73, %74 : vector<8x8xf32>
    %76 = vector.broadcast %43 : vector<1x8xf32> to vector<8x8xf32>
    %77 = arith.addf %75, %76 : vector<8x8xf32>
    %cst_30 = arith.constant dense<0xFF800000> : vector<8xf32>
    %78 = vector.multi_reduction <maximumf>, %77, %cst_30 [1] : vector<8x8xf32> to vector<8xf32>
    %79 = vector.shape_cast %78 : vector<8xf32> to vector<8x1xf32>
    %80 = vector.broadcast %79 : vector<8x1xf32> to vector<8x8xf32>
    %81 = arith.subf %77, %80 : vector<8x8xf32>
    %82 = math.exp %81 : vector<8x8xf32>
    %cst_31 = arith.constant dense<0.000000e+00> : vector<8xf32>
    %83 = vector.multi_reduction <add>, %82, %cst_31 [1] : vector<8x8xf32> to vector<8xf32>
    %84 = vector.shape_cast %83 : vector<8xf32> to vector<8x1xf32>
    %85 = tpu.reciprocal %84 {approx = true} : vector<8x1xf32> -> vector<8x1xf32>
    %86 = vector.broadcast %85 : vector<8x1xf32> to vector<8x8xf32>
    %87 = arith.mulf %82, %86 : vector<8x8xf32>
    %88 = arith.truncf %87 : vector<8x8xf32> to vector<8x8xbf16>
    %cst_32 = arith.constant dense<0.000000e+00> : vector<8x8xf32>
    %89 = tpu.matmul %88, %72, %cst_32 {dimension_numbers = #tpu.dot_dimension_numbers<[1], [0], [0], [1], [0, 0, 1, 1], [], []>} : vector<8x8xbf16>, vector<8x8xbf16>, vector<8x8xf32> -> vector<8x8xf32>
    %90 = vector.extract_strided_slice %39 {offsets = [0, 16], sizes = [8, 8], strides = [1, 1]} : vector<8x32xf32> to vector<8x8xf32>
    %91 = arith.truncf %90 : vector<8x8xf32> to vector<8x8xbf16>
    %92 = vector.extract_strided_slice %40 {offsets = [0, 16], sizes = [8, 8], strides = [1, 1]} : vector<8x32xf32> to vector<8x8xf32>
    %93 = arith.truncf %92 : vector<8x8xf32> to vector<8x8xbf16>
    %94 = vector.extract_strided_slice %41 {offsets = [0, 16], sizes = [8, 8], strides = [1, 1]} : vector<8x32xf32> to vector<8x8xf32>
    %95 = arith.truncf %94 : vector<8x8xf32> to vector<8x8xbf16>
    %cst_33 = arith.constant dense<0.000000e+00> : vector<8x8xf32>
    %96 = tpu.matmul %91, %93, %cst_33 {dimension_numbers = #tpu.dot_dimension_numbers<[1], [1], [0], [0], [0, 0, 1, 0], [], []>} : vector<8x8xbf16>, vector<8x8xbf16>, vector<8x8xf32> -> vector<8x8xf32>
    %cst_34 = arith.constant 0.353553385 : f32
    %97 = vector.broadcast %cst_34 : f32 to vector<8x8xf32>
    %98 = arith.mulf %96, %97 : vector<8x8xf32>
    %99 = vector.broadcast %43 : vector<1x8xf32> to vector<8x8xf32>
    %100 = arith.addf %98, %99 : vector<8x8xf32>
    %cst_35 = arith.constant dense<0xFF800000> : vector<8xf32>
    %101 = vector.multi_reduction <maximumf>, %100, %cst_35 [1] : vector<8x8xf32> to vector<8xf32>
    %102 = vector.shape_cast %101 : vector<8xf32> to vector<8x1xf32>
    %103 = vector.broadcast %102 : vector<8x1xf32> to vector<8x8xf32>
    %104 = arith.subf %100, %103 : vector<8x8xf32>
    %105 = math.exp %104 : vector<8x8xf32>
    %cst_36 = arith.constant dense<0.000000e+00> : vector<8xf32>
    %106 = vector.multi_reduction <add>, %105, %cst_36 [1] : vector<8x8xf32> to vector<8xf32>
    %107 = vector.shape_cast %106 : vector<8xf32> to vector<8x1xf32>
    %108 = tpu.reciprocal %107 {approx = true} : vector<8x1xf32> -> vector<8x1xf32>
    %109 = vector.broadcast %108 : vector<8x1xf32> to vector<8x8xf32>
    %110 = arith.mulf %105, %109 : vector<8x8xf32>
    %111 = arith.truncf %110 : vector<8x8xf32> to vector<8x8xbf16>
    %cst_37 = arith.constant dense<0.000000e+00> : vector<8x8xf32>
    %112 = tpu.matmul %111, %95, %cst_37 {dimension_numbers = #tpu.dot_dimension_numbers<[1], [0], [0], [1], [0, 0, 1, 1], [], []>} : vector<8x8xbf16>, vector<8x8xbf16>, vector<8x8xf32> -> vector<8x8xf32>
    %113 = vector.extract_strided_slice %39 {offsets = [0, 24], sizes = [8, 8], strides = [1, 1]} : vector<8x32xf32> to vector<8x8xf32>
    %114 = arith.truncf %113 : vector<8x8xf32> to vector<8x8xbf16>
    %115 = vector.extract_strided_slice %40 {offsets = [0, 24], sizes = [8, 8], strides = [1, 1]} : vector<8x32xf32> to vector<8x8xf32>
    %116 = arith.truncf %115 : vector<8x8xf32> to vector<8x8xbf16>
    %117 = vector.extract_strided_slice %41 {offsets = [0, 24], sizes = [8, 8], strides = [1, 1]} : vector<8x32xf32> to vector<8x8xf32>
    %118 = arith.truncf %117 : vector<8x8xf32> to vector<8x8xbf16>
    %cst_38 = arith.constant dense<0.000000e+00> : vector<8x8xf32>
    %119 = tpu.matmul %114, %116, %cst_38 {dimension_numbers = #tpu.dot_dimension_numbers<[1], [1], [0], [0], [0, 0, 1, 0], [], []>} : vector<8x8xbf16>, vector<8x8xbf16>, vector<8x8xf32> -> vector<8x8xf32>
    %cst_39 = arith.constant 0.353553385 : f32
    %120 = vector.broadcast %cst_39 : f32 to vector<8x8xf32>
    %121 = arith.mulf %119, %120 : vector<8x8xf32>
    %122 = vector.broadcast %43 : vector<1x8xf32> to vector<8x8xf32>
    %123 = arith.addf %121, %122 : vector<8x8xf32>
    %cst_40 = arith.constant dense<0xFF800000> : vector<8xf32>
    %124 = vector.multi_reduction <maximumf>, %123, %cst_40 [1] : vector<8x8xf32> to vector<8xf32>
    %125 = vector.shape_cast %124 : vector<8xf32> to vector<8x1xf32>
    %126 = vector.broadcast %125 : vector<8x1xf32> to vector<8x8xf32>
    %127 = arith.subf %123, %126 : vector<8x8xf32>
    %128 = math.exp %127 : vector<8x8xf32>
    %cst_41 = arith.constant dense<0.000000e+00> : vector<8xf32>
    %129 = vector.multi_reduction <add>, %128, %cst_41 [1] : vector<8x8xf32> to vector<8xf32>
    %130 = vector.shape_cast %129 : vector<8xf32> to vector<8x1xf32>
    %131 = tpu.reciprocal %130 {approx = true} : vector<8x1xf32> -> vector<8x1xf32>
    %132 = vector.broadcast %131 : vector<8x1xf32> to vector<8x8xf32>
    %133 = arith.mulf %128, %132 : vector<8x8xf32>
    %134 = arith.truncf %133 : vector<8x8xf32> to vector<8x8xbf16>
    %cst_42 = arith.constant dense<0.000000e+00> : vector<8x8xf32>
    %135 = tpu.matmul %134, %118, %cst_42 {dimension_numbers = #tpu.dot_dimension_numbers<[1], [0], [0], [1], [0, 0, 1, 1], [], []>} : vector<8x8xbf16>, vector<8x8xbf16>, vector<8x8xf32> -> vector<8x8xf32>
    %136 = tpu.concatenate %66, %89, %112, %135 in 1 : vector<8x8xf32>, vector<8x8xf32>, vector<8x8xf32>, vector<8x8xf32> -> vector<8x32xf32>
    %137 = arith.truncf %136 : vector<8x32xf32> to vector<8x32xbf16>
    %c0_43 = arith.constant 0 : index
    %c0_44 = arith.constant 0 : index
    %c0_45 = arith.constant 0 : index
    %138 = vector.load %arg10[%c0_43, %c0_44, %c0_45] : memref<1x32x32xbf16, #tpu.memory_space<vmem>>, vector<1x32x32xbf16>
    %139 = vector.shape_cast %138 : vector<1x32x32xbf16> to vector<32x32xbf16>
    %cst_46 = arith.constant dense<0.000000e+00> : vector<8x32xf32>
    %140 = tpu.matmul %137, %139, %cst_46 {dimension_numbers = #tpu.dot_dimension_numbers<[1], [0], [0], [1], [0, 0, 1, 1], [], []>} : vector<8x32xbf16>, vector<32x32xbf16>, vector<8x32xf32> -> vector<8x32xf32>
    %c0_47 = arith.constant 0 : index
    %c0_48 = arith.constant 0 : index
    %c0_49 = arith.constant 0 : index
    %141 = vector.load %arg11[%c0_47, %c0_48, %c0_49] : memref<1x1x32xf32, #tpu.memory_space<vmem>>, vector<1x1x32xf32>
    %142 = vector.shape_cast %141 : vector<1x1x32xf32> to vector<1x32xf32>
    %143 = vector.broadcast %142 : vector<1x32xf32> to vector<8x32xf32>
    %144 = arith.addf %140, %143 : vector<8x32xf32>
    %145 = arith.addf %4, %144 : vector<8x32xf32>
    %c0_50 = arith.constant 0 : index
    %c0_51 = arith.constant 0 : index
    %c0_52 = arith.constant 0 : index
    %146 = vector.load %arg12[%c0_50, %c0_51, %c0_52] : memref<1x1x32xf32, #tpu.memory_space<vmem>>, vector<1x1x32xf32>
    %147 = vector.shape_cast %146 : vector<1x1x32xf32> to vector<1x32xf32>
    %c0_53 = arith.constant 0 : index
    %c0_54 = arith.constant 0 : index
    %c0_55 = arith.constant 0 : index
    %148 = vector.load %arg13[%c0_53, %c0_54, %c0_55] : memref<1x1x32xf32, #tpu.memory_space<vmem>>, vector<1x1x32xf32>
    %149 = vector.shape_cast %148 : vector<1x1x32xf32> to vector<1x32xf32>
    %cst_56 = arith.constant dense<0.000000e+00> : vector<8xf32>
    %150 = vector.multi_reduction <add>, %145, %cst_56 [1] : vector<8x32xf32> to vector<8xf32>
    %151 = vector.shape_cast %150 : vector<8xf32> to vector<8x1xf32>
    %cst_57 = arith.constant 3.200000e+01 : f32
    %152 = vector.broadcast %cst_57 : f32 to vector<8x1xf32>
    %153 = arith.divf %151, %152 : vector<8x1xf32>
    %154 = vector.broadcast %153 : vector<8x1xf32> to vector<8x32xf32>
    %155 = arith.subf %145, %154 : vector<8x32xf32>
    %156 = arith.mulf %155, %155 : vector<8x32xf32>
    %cst_58 = arith.constant dense<0.000000e+00> : vector<8xf32>
    %157 = vector.multi_reduction <add>, %156, %cst_58 [1] : vector<8x32xf32> to vector<8xf32>
    %158 = vector.shape_cast %157 : vector<8xf32> to vector<8x1xf32>
    %cst_59 = arith.constant 3.200000e+01 : f32
    %159 = vector.broadcast %cst_59 : f32 to vector<8x1xf32>
    %160 = arith.divf %158, %159 : vector<8x1xf32>
    %161 = vector.broadcast %153 : vector<8x1xf32> to vector<8x32xf32>
    %162 = arith.subf %145, %161 : vector<8x32xf32>
    %cst_60 = arith.constant 9.99999974E-6 : f32
    %163 = vector.broadcast %cst_60 : f32 to vector<8x1xf32>
    %164 = arith.addf %160, %163 : vector<8x1xf32>
    %165 = math.rsqrt %164 : vector<8x1xf32>
    %166 = vector.broadcast %165 : vector<8x1xf32> to vector<8x32xf32>
    %167 = arith.mulf %162, %166 : vector<8x32xf32>
    %168 = vector.broadcast %147 : vector<1x32xf32> to vector<8x32xf32>
    %169 = arith.mulf %167, %168 : vector<8x32xf32>
    %170 = vector.broadcast %149 : vector<1x32xf32> to vector<8x32xf32>
    %171 = arith.addf %169, %170 : vector<8x32xf32>
    %172 = arith.truncf %171 : vector<8x32xf32> to vector<8x32xbf16>
    %c0_61 = arith.constant 0 : index
    %c0_62 = arith.constant 0 : index
    %c0_63 = arith.constant 0 : index
    %173 = vector.load %arg14[%c0_61, %c0_62, %c0_63] : memref<1x32x64xbf16, #tpu.memory_space<vmem>>, vector<1x32x64xbf16>
    %174 = vector.shape_cast %173 : vector<1x32x64xbf16> to vector<32x64xbf16>
    %cst_64 = arith.constant dense<0.000000e+00> : vector<8x64xf32>
    %175 = tpu.matmul %172, %174, %cst_64 {dimension_numbers = #tpu.dot_dimension_numbers<[1], [0], [0], [1], [0, 0, 1, 1], [], []>} : vector<8x32xbf16>, vector<32x64xbf16>, vector<8x64xf32> -> vector<8x64xf32>
    %c0_65 = arith.constant 0 : index
    %c0_66 = arith.constant 0 : index
    %c0_67 = arith.constant 0 : index
    %176 = vector.load %arg15[%c0_65, %c0_66, %c0_67] : memref<1x1x64xf32, #tpu.memory_space<vmem>>, vector<1x1x64xf32>
    %177 = vector.shape_cast %176 : vector<1x1x64xf32> to vector<1x64xf32>
    %178 = vector.broadcast %177 : vector<1x64xf32> to vector<8x64xf32>
    %179 = arith.addf %175, %178 : vector<8x64xf32>
    %cst_68 = arith.constant 0.000000e+00 : f32
    %180 = vector.broadcast %cst_68 : f32 to vector<8x64xf32>
    %181 = arith.maximumf %179, %180 : vector<8x64xf32>
    %182 = arith.truncf %181 : vector<8x64xf32> to vector<8x64xbf16>
    %c0_69 = arith.constant 0 : index
    %c0_70 = arith.constant 0 : index
    %c0_71 = arith.constant 0 : index
    %183 = vector.load %arg16[%c0_69, %c0_70, %c0_71] : memref<1x64x32xbf16, #tpu.memory_space<vmem>>, vector<1x64x32xbf16>
    %184 = vector.shape_cast %183 : vector<1x64x32xbf16> to vector<64x32xbf16>
    %cst_72 = arith.constant dense<0.000000e+00> : vector<8x32xf32>
    %185 = tpu.matmul %182, %184, %cst_72 {dimension_numbers = #tpu.dot_dimension_numbers<[1], [0], [0], [1], [0, 0, 1, 1], [], []>} : vector<8x64xbf16>, vector<64x32xbf16>, vector<8x32xf32> -> vector<8x32xf32>
    %c0_73 = arith.constant 0 : index
    %c0_74 = arith.constant 0 : index
    %c0_75 = arith.constant 0 : index
    %186 = vector.load %arg17[%c0_73, %c0_74, %c0_75] : memref<1x1x32xf32, #tpu.memory_space<vmem>>, vector<1x1x32xf32>
    %187 = vector.shape_cast %186 : vector<1x1x32xf32> to vector<1x32xf32>
    %188 = vector.broadcast %187 : vector<1x32xf32> to vector<8x32xf32>
    %189 = arith.addf %185, %188 : vector<8x32xf32>
    %190 = arith.addf %145, %189 : vector<8x32xf32>
    %c0_76 = arith.constant 0 : index
    %c0_77 = arith.constant 0 : index
    %c0_78 = arith.constant 0 : index
    %191 = vector.load %arg21[%c0_76, %c0_77, %c0_78] : memref<1x8x32xf32, #tpu.memory_space<vmem>>, vector<1x8x32xf32>
    %192 = vector.shape_cast %191 : vector<1x8x32xf32> to vector<8x32xf32>
    %193 = vector.shape_cast %190 : vector<8x32xf32> to vector<1x8x32xf32>
    tpu.vector_store %arg21[%c0_76, %c0_77, %c0_78], %193 {strides = array<i32>} : memref<1x8x32xf32, #tpu.memory_space<vmem>>, vector<1x8x32xf32>,
    %c1_i32 = arith.constant 1 : i32
    %194 = arith.cmpi eq, %arg1, %c1_i32 : i32
    %195 = arith.extui %194 : i1 to i32
    %c0_i32_79 = arith.constant 0 : i32
    %196 = arith.cmpi ne, %195, %c0_i32_79 : i32
    scf.if %196 {
      %c0_80 = arith.constant 0 : index
      %c0_81 = arith.constant 0 : index
      %197 = vector.load %arg18[%c0_80, %c0_81] : memref<1x32xf32, #tpu.memory_space<vmem>>, vector<1x32xf32>
      %c0_82 = arith.constant 0 : index
      %c0_83 = arith.constant 0 : index
      %198 = vector.load %arg19[%c0_82, %c0_83] : memref<1x32xf32, #tpu.memory_space<vmem>>, vector<1x32xf32>
      %cst_84 = arith.constant dense<0.000000e+00> : vector<8xf32>
      %199 = vector.multi_reduction <add>, %190, %cst_84 [1] : vector<8x32xf32> to vector<8xf32>
      %200 = vector.shape_cast %199 : vector<8xf32> to vector<8x1xf32>
      %cst_85 = arith.constant 3.200000e+01 : f32
      %201 = vector.broadcast %cst_85 : f32 to vector<8x1xf32>
      %202 = arith.divf %200, %201 : vector<8x1xf32>
      %203 = vector.broadcast %202 : vector<8x1xf32> to vector<8x32xf32>
      %204 = arith.subf %190, %203 : vector<8x32xf32>
      %205 = arith.mulf %204, %204 : vector<8x32xf32>
      %cst_86 = arith.constant dense<0.000000e+00> : vector<8xf32>
      %206 = vector.multi_reduction <add>, %205, %cst_86 [1] : vector<8x32xf32> to vector<8xf32>
      %207 = vector.shape_cast %206 : vector<8xf32> to vector<8x1xf32>
      %cst_87 = arith.constant 3.200000e+01 : f32
      %208 = vector.broadcast %cst_87 : f32 to vector<8x1xf32>
      %209 = arith.divf %207, %208 : vector<8x1xf32>
      %210 = vector.broadcast %202 : vector<8x1xf32> to vector<8x32xf32>
      %211 = arith.subf %190, %210 : vector<8x32xf32>
      %cst_88 = arith.constant 9.99999974E-6 : f32
      %212 = vector.broadcast %cst_88 : f32 to vector<8x1xf32>
      %213 = arith.addf %209, %212 : vector<8x1xf32>
      %214 = math.rsqrt %213 : vector<8x1xf32>
      %215 = vector.broadcast %214 : vector<8x1xf32> to vector<8x32xf32>
      %216 = arith.mulf %211, %215 : vector<8x32xf32>
      %217 = vector.broadcast %197 : vector<1x32xf32> to vector<8x32xf32>
      %218 = arith.mulf %216, %217 : vector<8x32xf32>
      %219 = vector.broadcast %198 : vector<1x32xf32> to vector<8x32xf32>
      %220 = arith.addf %218, %219 : vector<8x32xf32>
      %c0_89 = arith.constant 0 : index
      %c0_90 = arith.constant 0 : index
      %c0_91 = arith.constant 0 : index
      %221 = vector.load %arg20[%c0_89, %c0_90, %c0_91] : memref<1x8x32xf32, #tpu.memory_space<vmem>>, vector<1x8x32xf32>
      %222 = vector.shape_cast %221 : vector<1x8x32xf32> to vector<8x32xf32>
      %223 = vector.shape_cast %220 : vector<8x32xf32> to vector<1x8x32xf32>
      tpu.vector_store %arg20[%c0_89, %c0_90, %c0_91], %223 {strides = array<i32>} : memref<1x8x32xf32, #tpu.memory_space<vmem>>, vector<1x8x32xf32>,
    } else {
    }
    return
  }
  func.func @transform_0(%arg0: i32, %arg1: i32) -> (i32, i32, i32) {
    %c0_i32 = arith.constant 0 : i32
    %c0_i32_0 = arith.constant 0 : i32
    %c0_i32_1 = arith.constant 0 : i32
    return %arg0, %c0_i32, %c0_i32_0 : i32, i32, i32
  }
  func.func @transform_1(%arg0: i32, %arg1: i32) -> (i32, i32, i32) {
    %c0_i32 = arith.constant 0 : i32
    %c0_i32_0 = arith.constant 0 : i32
    %c0_i32_1 = arith.constant 0 : i32
    return %arg0, %c0_i32, %c0_i32_0 : i32, i32, i32
  }
  func.func @transform_2(%arg0: i32, %arg1: i32) -> (i32, i32) {
    %c0_i32 = arith.constant 0 : i32
    %c0_i32_0 = arith.constant 0 : i32
    %c0_i32_1 = arith.constant 0 : i32
    return %c0_i32, %c0_i32_0 : i32, i32
  }
  func.func @transform_3(%arg0: i32, %arg1: i32) -> (i32, i32) {
    %c0_i32 = arith.constant 0 : i32
    %c0_i32_0 = arith.constant 0 : i32
    %c0_i32_1 = arith.constant 0 : i32
    return %c0_i32, %c0_i32_0 : i32, i32
  }
  func.func @transform_4(%arg0: i32, %arg1: i32) -> (i32, i32, i32) {
    %c0_i32 = arith.constant 0 : i32
    %c0_i32_0 = arith.constant 0 : i32
    %c0_i32_1 = arith.constant 0 : i32
    return %arg1, %c0_i32, %c0_i32_0 : i32, i32, i32
  }
  func.func @transform_5(%arg0: i32, %arg1: i32) -> (i32, i32, i32) {
    %c0_i32 = arith.constant 0 : i32
    %c0_i32_0 = arith.constant 0 : i32
    %c0_i32_1 = arith.constant 0 : i32
    return %arg1, %c0_i32, %c0_i32_0 : i32, i32, i32
  }
  func.func @transform_6(%arg0: i32, %arg1: i32) -> (i32, i32, i32) {
    %c0_i32 = arith.constant 0 : i32
    %c0_i32_0 = arith.constant 0 : i32
    %c0_i32_1 = arith.constant 0 : i32
    return %arg1, %c0_i32, %c0_i32_0 : i32, i32, i32
  }
  func.func @transform_7(%arg0: i32, %arg1: i32) -> (i32, i32, i32) {
    %c0_i32 = arith.constant 0 : i32
    %c0_i32_0 = arith.constant 0 : i32
    %c0_i32_1 = arith.constant 0 : i32
    return %arg1, %c0_i32, %c0_i32_0 : i32, i32, i32
  }
  func.func @transform_8(%arg0: i32, %arg1: i32) -> (i32, i32, i32) {
    %c0_i32 = arith.constant 0 : i32
    %c0_i32_0 = arith.constant 0 : i32
    %c0_i32_1 = arith.constant 0 : i32
    return %arg1, %c0_i32, %c0_i32_0 : i32, i32, i32
  }
  func.func @transform_9(%arg0: i32, %arg1: i32) -> (i32, i32, i32) {
    %c0_i32 = arith.constant 0 : i32
    %c0_i32_0 = arith.constant 0 : i32
    %c0_i32_1 = arith.constant 0 : i32
    return %arg1, %c0_i32, %c0_i32_0 : i32, i32, i32
  }
  func.func @transform_10(%arg0: i32, %arg1: i32) -> (i32, i32, i32) {
    %c0_i32 = arith.constant 0 : i32
    %c0_i32_0 = arith.constant 0 : i32
    %c0_i32_1 = arith.constant 0 : i32
    return %arg1, %c0_i32, %c0_i32_0 : i32, i32, i32
  }
  func.func @transform_11(%arg0: i32, %arg1: i32) -> (i32, i32, i32) {
    %c0_i32 = arith.constant 0 : i32
    %c0_i32_0 = arith.constant 0 : i32
    %c0_i32_1 = arith.constant 0 : i32
    return %arg1, %c0_i32, %c0_i32_0 : i32, i32, i32
  }
  func.func @transform_12(%arg0: i32, %arg1: i32) -> (i32, i32, i32) {
    %c0_i32 = arith.constant 0 : i32
    %c0_i32_0 = arith.constant 0 : i32
    %c0_i32_1 = arith.constant 0 : i32
    return %arg1, %c0_i32, %c0_i32_0 : i32, i32, i32
  }
  func.func @transform_13(%arg0: i32, %arg1: i32) -> (i32, i32, i32) {
    %c0_i32 = arith.constant 0 : i32
    %c0_i32_0 = arith.constant 0 : i32
    %c0_i32_1 = arith.constant 0 : i32
    return %arg1, %c0_i32, %c0_i32_0 : i32, i32, i32
  }
  func.func @transform_14(%arg0: i32, %arg1: i32) -> (i32, i32, i32) {
    %c0_i32 = arith.constant 0 : i32
    %c0_i32_0 = arith.constant 0 : i32
    %c0_i32_1 = arith.constant 0 : i32
    return %arg1, %c0_i32, %c0_i32_0 : i32, i32, i32
  }
  func.func @transform_15(%arg0: i32, %arg1: i32) -> (i32, i32, i32) {
    %c0_i32 = arith.constant 0 : i32
    %c0_i32_0 = arith.constant 0 : i32
    %c0_i32_1 = arith.constant 0 : i32
    return %arg1, %c0_i32, %c0_i32_0 : i32, i32, i32
  }
  func.func @transform_16(%arg0: i32, %arg1: i32) -> (i32, i32) {
    %c0_i32 = arith.constant 0 : i32
    %c0_i32_0 = arith.constant 0 : i32
    %c0_i32_1 = arith.constant 0 : i32
    return %c0_i32, %c0_i32_0 : i32, i32
  }
  func.func @transform_17(%arg0: i32, %arg1: i32) -> (i32, i32) {
    %c0_i32 = arith.constant 0 : i32
    %c0_i32_0 = arith.constant 0 : i32
    %c0_i32_1 = arith.constant 0 : i32
    return %c0_i32, %c0_i32_0 : i32, i32
  }
  func.func @transform_18(%arg0: i32, %arg1: i32) -> (i32, i32, i32) {
    %c0_i32 = arith.constant 0 : i32
    %c0_i32_0 = arith.constant 0 : i32
    %c0_i32_1 = arith.constant 0 : i32
    return %arg0, %c0_i32, %c0_i32_0 : i32, i32, i32
  }
}

</mosaic_0001>

<bundles_post_ra>
// kernel: _lambda_.1
= control target key start
LH: loop header
LB: loop body
LE: loop exit
PB: predicated region body
PF: predicated region fallthrough
CT: control target
= control target key end

     0   :  { %s2346_s27 = smov 0   ;;  %s2348_s28 = smov 0   ;;  %s2636_s0 = inlined_call_operand.vmem [shape: f32[2,8,24], index: 0, kind: input, shape index: {}]   ;;  %s2637_s1 = inlined_call_operand.vmem [shape: f32[2,1,8], index: 1, kind: input, shape index: {}]   ;;  %s2638_s2 = inlined_call_operand.vmem [shape: bf16[24,32], index: 2, kind: input, shape index: {}]   ;;  %s2639_s3 = inlined_call_operand.vmem [shape: f32[1,32], index: 3, kind: input, shape index: {}]   ;;  %s2640_s4 = inlined_call_operand.vmem [shape: f32[2,1,32], index: 4, kind: input, shape index: {}]   ;;  %s2641_s5 = inlined_call_operand.vmem [shape: f32[2,1,32], index: 5, kind: input, shape index: {}]   ;;  %s2642_s6 = inlined_call_operand.vmem [shape: bf16[2,32,96], index: 6, kind: input, shape index: {}]   ;;  %s2643_s7 = inlined_call_operand.vmem [shape: f32[2,1,96], index: 7, kind: input, shape index: {}]   ;;  %s2644_s8 = inlined_call_operand.vmem [shape: bf16[2,32,32], index: 8, kind: input, shape index: {}]   ;;  %s2645_s9 = inlined_call_operand.vmem [shape: f32[2,1,32], index: 9, kind: input, shape index: {}]   ;;  %s2646_s10 = inlined_call_operand.vmem [shape: f32[2,1,32], index: 10, kind: input, shape index: {}]   ;;  %s2647_s11 = inlined_call_operand.vmem [shape: f32[2,1,32], index: 11, kind: input, shape index: {}]   ;;  %s2648_s12 = inlined_call_operand.vmem [shape: bf16[2,32,64], index: 12, kind: input, shape index: {}]   ;;  %s2649_s13 = inlined_call_operand.vmem [shape: f32[2,1,64], index: 13, kind: input, shape index: {}]   ;;  %s2650_s14 = inlined_call_operand.vmem [shape: bf16[2,64,32], index: 14, kind: input, shape index: {}]   ;;  %s2651_s15 = inlined_call_operand.vmem [shape: f32[2,1,32], index: 15, kind: input, shape index: {}]   ;;  %s2652_s16 = inlined_call_operand.vmem [shape: f32[1,32], index: 16, kind: input, shape index: {}]   ;;  %s2653_s17 = inlined_call_operand.vmem [shape: f32[1,32], index: 17, kind: input, shape index: {}]   ;;  %s2654_s18 = inlined_call_operand.vmem [shape: f32[2,8,32], index: 18, kind: output, shape index: {}]  }
   0x1   :  { %2660 = sst [smem:[#allocation9_spill]] %s2636_s0  ;;  %s2350_s29 = smov 0  }
   0x2   :  { %2661 = sst [smem:[#allocation10_spill]] %s2637_s1  ;;  %s2352_s30 = smov 0  }
   0x3   :  { %2662 = sst [smem:[#allocation11_spill]] %s2638_s2  ;;  %s2354_s0 = smov 0  }
   0x4   :  { %2663 = sst [smem:[#allocation12_spill]] %s2639_s3 }
   0x5   :  { %2664 = sst [smem:[#allocation13_spill]] %s2642_s6 }
   0x6   :  { %2665 = sst [smem:[#allocation14_spill]] %s2644_s8 }
   0x7   :  { %2666 = sst [smem:[#allocation15_spill]] %s2645_s9 }
   0x8   :  { %2667 = sst [smem:[#allocation16_spill]] %s2646_s10 }
   0x9   :  { %2668 = sst [smem:[#allocation17_spill]] %s2650_s14 }
   0xa   :  { %2669 = sst [smem:[#allocation18_spill]] %s2651_s15 }
   0xb   :  { %2670 = sst [smem:[#allocation19_spill]] %s2652_s16 }
   0xc   :  { %2671 = sst [smem:[#allocation20_spill]] %s2653_s17 }
   0xd   :  { %2672 = sst [smem:[#allocation21_spill]] %s2654_s18 }
   0xe LB: > { %2673 = sst [smem:[#allocation3_spill]] %s2215_s27  ;;  %s37_s19 = sadd.s32 1, %s2223_s29  ;;  %s2231_s0 = sphi %s2354_s0, %s28_s0   ;;  %s2227_s30 = sphi %s2352_s30, %s2709_s30   ;;  %s2223_s29 = sphi %s2350_s29, %s2708_s29   ;;  %s2219_s28 = sphi %s2348_s28, %s2707_s28   ;;  %s2215_s27 = sphi %s2346_s27, %s2706_s27  }
   0xf   : > { %2674 = sst [smem:[#allocation4_spill]] %s2223_s29  ;;  %s40_s1 = sadd.s32 1, %s2227_s30 }
  0x10   : > { %2675 = sst [smem:[#allocation5_spill]] %s2227_s30  ;;  %p38_p0 = scmp.ge.s32.totalorder %s37_s19, 2 }
  0x11   : > { %2676 = sst [smem:[#allocation6_spill]] %s2231_s0  ;;  %p1920_p1 = scmp.ge.s32.totalorder %s2231_s0, 1 }
  0x12   : > { %p635_p2 = scmp.lt.s32.totalorder %s2231_s0, 5  ;;  %s2711_s19 = smov (%p38_p0, %s37_s19), 0 }
  0x13   : > { %2677 = sst [smem:[#allocation7_spill]] %s2711_s19  ;;  %s2713_s1 = smov (!%p38_p0, %s40_s1), %s2227_s30 }
  0x14   : > { %p636_p3 = pnand %p1920_p1, %p635_p2  ;;  %p42_p4 = scmp.ge.s32.totalorder %s2713_s1, 2 }
  0x15   : > { %p734_p5 = scmp.lt.s32.totalorder (!%p636_p3), %s2219_s28, 1  ;;  %p741_p6 = scmp.lt.s32.totalorder (!%p636_p3), %s2215_s27, 1 }
  0x16   : > { %s2715_s1 = smov (%p42_p4, %s2713_s1), 0  ;;  %639 = sbr.rel (%p636_p3) target bundleno = 2987 (0xbab), region = 92 }
  0x17   : > { %2678 = sst [smem:[#allocation8_spill]] %s2715_s1 }
  0x18   : > { %s2680_s1 = sld [smem:[#allocation9_spill]] (!%p636_p3) }
  0x19   : > { %s2681_s6 = sld [smem:[#allocation13_spill]] (!%p636_p3) }
  0x1a   : > { %s2682_s8 = sld [smem:[#allocation14_spill]] (!%p636_p3) }
  0x1b   : > { %s2717_s28 = smov (!%p734_p5, %s2219_s28), 1  ;;  %s2685_s16 = sld [smem:[#allocation18_spill]] }
  0x1c   : > { %s2382_s20 = scalar_select %p741_p6, %s2215_s27, 1 }
  0x1d   : > { %s1921_s21 = sshll.u32 %s2717_s28, 3  ;;  %s2686_s3 = sld [smem:[#allocation17_spill]] }
  0x1e   : > { %s737_s19 = scalar_lea.vmem %s2680_s1, %s1921_s21  ;;  %s1972_s27 = sshll.u32 %s2382_s20, 4 }
  0x1f   : > { %s2404_s15 = scalar_lea.vmem %s2681_s6, %s1972_s27  ;;  %s2430_s2 = scalar_lea.vmem %s2648_s12, %s1972_s27 }
  0x20   : > { %s2413_s26 = scalar_lea.vmem %s2682_s8, %s1972_s27  ;;  %s776_s23 = scalar_lea.vmem %s2649_s13, %s2382_s20 }
  0x21   : > { %s1975_s8 = sshll.u32 %s2382_s20, 5  ;;  %s784_s9 = scalar_lea.vmem %s2685_s16, %s2382_s20 }
  0x22   : > { %s2687_s0 = sld [smem:[#allocation21_spill]] }
  0x23   : > { %s2444_s10 = scalar_lea.vmem %s2686_s3, %s1975_s8  ;;  %s2688_s27 = sld [smem:[#allocation3_spill]] }
  0x28   : > { %s2449_s6 = scalar_lea.vmem %s2687_s0, %s1921_s21 }
  0x29   : > { %p1931_p7 = scmp.ne.s32.totalorder %s2688_s27, 0 }
  0x2a   : > { %s2689_s1 = sld [smem:[#allocation11_spill]] (!%p1931_p7) }
  0x2b   : > { %793 = sbr.rel (%p1931_p7) target bundleno = 256 (0x100), region = 96  ;;  %s2690_s16 = sld [smem:[#allocation12_spill]] (!%p1931_p7) }
  0x30   : > { %v2159_v0 = vld [vmem:[%s2689_s1 + $0x8] ss:$0 sps:$4 sm:$0xff]   ;;  %vm819_vm0 = vcmask 1043456   ;;  %v2233_v1 = vmov 0.0   ;;  %vm2234_vm1 = vmmov 0   ;;  %v2160_v3 = vld [vmem:[%s2689_s1] sm:$0xff]  }
  0x31   : > { %2009 = vmatprep.subr.bf16.mxu0 %v2233_v1  ;;  %v821_v2 = vsel %vm819_vm0, %v2159_v0, 0  ;;  %2013 = vmatprep.mubr.msk.bf16.mxu0 %vm2234_vm1, %v2233_v1  ;;  %v794_v4 = vld [vmem:[%s737_s19] sm:$0xff]  ;;  %vm815_vm2 = vcmask 195584   ;;  %vm863_vm3 = vcmask 261120  }
  0x32   : > { %2010 = vmatpush3.bf16.msra.mxu0 %v821_v2  ;;  %v795_v5 = vpack.c.bf16 %v794_v4, %v794_v4  ;;  %v1932_v6 = vld [vmem:[%s2690_s16] ss:$0 sm:$0xff] }
  0x33   : > { %2011 = vmatprep.subr.bf16.mxu0 %v2233_v1 }
  0x36   : > { %2012 = vmatpush3.bf16.msra.mxu0 %v2160_v3 }
  0x39   : > { %2014 = vmatmul.mubr.msk.bf16.vlgmr.msra.gmra.mxu0 %vm815_vm2, %v795_v5 }
  0xf9   : > { %v857_v7 = vpop.f32.mrf.mxu0 }
  0xfa   : > { %v858_v8 = vadd.f32 %v1932_v6, %v857_v7 }
  0xfb   : > { %v2015_v9 = vpop.f32.mrf.mxu0 }
  0xfc   : > { %864 = vst.msk [vmem:[#allocation2] sm:$0xff] %vm863_vm3, %v858_v8 }
  0xfd   : > { %v860_v10 = vpop.f32.mrf.mxu0 }
  0xff   : > { %v2016_v11 = vpop.f32.mrf.mxu0 }
 0x100 PF: > { %vm868_vm4 = vcmask 261120   ;;  %v2161_v19 = vld [vmem:[%s2404_s15 + $0x8] sm:$0xff]   ;;  %v2235_v20 = vmov 0.0   ;;  %vm2236_vm5 = vmmov 0   ;;  %v2162_v21 = vld [vmem:[%s2404_s15] sm:$0xff]   ;;  %s2691_s15 = scalar_lea.vmem %s2640_s4, %s2382_s20  ;;  %s2692_s17 = scalar_lea.vmem %s2641_s5, %s2382_s20  ;;  %vm969_vm6 = vcmask 64512  }
 0x101   : > { %2017 = vmatprep.subr.bf16.mxu0 %v2235_v20  ;;  %2021 = vmatprep.mubr.msk.bf16.mxu0 %vm2236_vm5, %v2235_v20  ;;  %v1936_v26 = vld [vmem:[%s2691_s15] ss:$0 sm:$0xff]  ;;  %s2693_s27 = scalar_lea.vmem %s2643_s7, %s2382_s20  ;;  %s2237_s22 = smov 120   ;;  %vm1041_vm7 = vcmask 1043456   ;;  %vm1434_vm8 = vcmask 130048   ;;  %vm1436_vm9 = vcmask 195584  }
 0x102   : > { %2018 = vmatpush3.bf16.msra.mxu0 %v2161_v19  ;;  %2025 = vmatprep.subr.bf16.mxu1 %v2235_v20  ;;  %v1937_v28 = vld [vmem:[%s2692_s17] ss:$0 sm:$0xff]  ;;  %s2238_s25 = smov 96   ;;  %s2239_s3 = smov 88   ;;  %vm1643_vm10 = vcmask 523264  }
 0x103   : > { %v2461_v12 = vld [vmem:[#allocation2] sm:$0xff]  ;;  %2019 = vmatprep.subr.bf16.mxu0 %v2235_v20  ;;  %2027 = vmatprep.mubr.msk.bf16.mxu1 %vm2236_vm5, %v2235_v20  ;;  %s2240_s8 = smov 80   ;;  %s2241_s0 = smov 112  }
 0x104   : > { %v869_v13 = vsel %vm868_vm4, %v2461_v12, 0.0  ;;  %v1938_v32 = vld [vmem:[%s2693_s27] ss:$0 sm:$0xff]  ;;  %s2242_s21 = smov 72   ;;  %s2243_s16 = smov 104  }
 0x105   : > { %870 = vadd.xlane.f32.xlu0 %v869_v13  ;;  %s2694_s15 = sld [smem:[#allocation10_spill]]  ;;  %s2245_s24 = smov 56  }
 0x106   : > { %2020 = vmatpush3.bf16.msra.mxu0 %v2162_v21  ;;  %s2246_s17 = smov 48   ;;  %s2247_s14 = smov 40  }
 0x107   : > { %2031 = vmatprep.subr.bf16.mxu0 %v2235_v20  ;;  %s2248_s18 = smov 8   ;;  %s2249_s27 = smov 16  }
 0x10b   : > { %s2695_s30 = scalar_lea.vmem %s2694_s15, %s2717_s28  ;;  %s2244_s28 = smov 64  }
 0x10c   : > { %v1943_v51 = vld [vmem:[%s2695_s30] ss:$0 sm:$0xff]  ;;  %s2700_s15 = scalar_lea.vmem %s2647_s11, %s2382_s20 }
 0x18e   : > { %v871_v14 = vpop.xlane.xlu0 %870 }
 0x18f   : > { %v873_v15 = vmul.f32 0.03125, %v871_v14 }
 0x191   : > { %v874_v16 = vsub.f32 %v2461_v12, %v873_v15 }
 0x193   : > { %v875_v17 = vmul.f32 %v874_v16, %v874_v16 }
 0x195   : > { %v876_v18 = vsel %vm868_vm4, %v875_v17, 0.0 }
 0x196   : > { %877 = vadd.xlane.f32.xlu0 %v876_v18 }
 0x21f   : > { %v878_v22 = vpop.xlane.xlu0 %877 }
 0x220   : > { %v879_v23 = vmul.f32 0.03125, %v878_v22 }
 0x222   : > { %v880_v24 = vadd.f32 1e-05, %v879_v23 }
 0x224   : > { %2171 = vrsqrt.f32 %v880_v24 }
 0x231   : > { %v2172_v25 = vpop.eup %2171 }
 0x232   : > { %v882_v27 = vmul.f32 %v2172_v25, %v874_v16 }
 0x234   : > { %v889_v29 = vmul.f32 %v1936_v26, %v882_v27 }
 0x236   : > { %v896_v30 = vadd.f32 %v1937_v28, %v889_v29 }
 0x238   : > { %v897_v31 = vpack.c.bf16 %v896_v30, %v896_v30 }
 0x23a   : > { %2022 = vmatmul.mubr.msk.bf16.vlgmr.msra.gmra.mxu0 %vm868_vm4, %v897_v31 }
 0x23b   : > { %2033 = vmatprep.mubr.msk.bf16.mxu0 %vm2236_vm5, %v2235_v20 }
 0x2fa   : > { %v958_v33 = vpop.f32.mrf.mxu0 }
 0x2fb   : > { %v959_v34 = vadd.f32 %v1938_v32, %v958_v33 }
 0x2fc   : > { %v2023_v35 = vpop.f32.mrf.mxu0 }
 0x2fd   : > { %v2495_v36 = vpack.c.bf16 %v959_v34, %v959_v34 }
 0x2fe   : > { %v961_v37 = vpop.f32.mrf.mxu0 }
 0x2ff   : > { %1085 = vrot.lane.b32.xlu0 %v2495_v36, %s2237_s22  ;;  %967 = vrot.lane.b32.xlu1 %v2495_v36, %s2238_s25  ;;  %s2250_s22 = smov 24  }
 0x300   : > { %v2024_v38 = vpop.f32.mrf.mxu0 }
 0x303   : > { %1087 = vrot.lane.b32.xlu1 %v2495_v36, %s2239_s3  ;;  %s2696_s3 = sld [smem:[#allocation15_spill]] }
 0x307   : > { %1199 = vrot.lane.b32.xlu1 %v2495_v36, %s2240_s8 }
 0x309   : > { %s2697_s8 = scalar_lea.vmem %s2696_s3, %s2382_s20 }
 0x30b   : > { %1197 = vrot.lane.b32.xlu1 %v2495_v36, %s2241_s0 }
 0x30f   : > { %1311 = vrot.lane.b32.xlu1 %v2495_v36, %s2242_s21  ;;  %s2698_s21 = sld [smem:[#allocation16_spill]] }
 0x313   : > { %1309 = vrot.lane.b32.xlu1 %v2495_v36, %s2243_s16 }
 0x315   : > { %s2699_s16 = scalar_lea.vmem %s2698_s21, %s2382_s20 }
 0x371   : > { %v968_v39 = vpop.permute.xlu1 %967  ;;  %v1086_v44 = vpop.permute.xlu0 %1085 }
 0x372   : > { %v974_v40 = vsel %vm969_vm6, %v968_v39, 0 }
 0x373   : > { %2026 = vmatpush3.bf16.xpose.msra.mxu1 %v974_v40 }
 0x374   : > { %2037 = vmatprep.subr.bf16.mxu1 %v2235_v20 }
 0x375   : > { %v1088_v41 = vpop.permute.xlu1 %1087 }
 0x376   : > { %v1093_v42 = vsel %vm969_vm6, %v1088_v41, 0 }
 0x379   : > { %v1200_v43 = vpop.permute.xlu1 %1199 }
 0x37a   : > { %2028 = vmatmul.mubr.msk.bf16.vlgmr.msra.gmra.mxu1 %vm969_vm6, %v2495_v36  ;;  %v1205_v46 = vsel %vm969_vm6, %v1200_v43, 0 }
 0x37b   : > { %2038 = vmatpush3.bf16.xpose.msra.mxu1 %v1093_v42  ;;  %2039 = vmatprep.mubr.msk.bf16.mxu1 %vm2236_vm5, %v2235_v20 }
 0x37c   : > { %2049 = vmatprep.subr.bf16.mxu1 %v2235_v20 }
 0x37d   : > { %v1198_v45 = vpop.permute.xlu1 %1197 }
 0x381   : > { %v1312_v47 = vpop.permute.xlu1 %1311 }
 0x382   : > { %2040 = vmatmul.mubr.msk.bf16.vlgmr.msra.gmra.mxu1 %vm969_vm6, %v1086_v44  ;;  %v1317_v48 = vsel %vm969_vm6, %v1312_v47, 0 }
 0x383   : > { %2050 = vmatpush3.bf16.xpose.msra.mxu1 %v1205_v46  ;;  %2051 = vmatprep.mubr.msk.bf16.mxu1 %vm2236_vm5, %v2235_v20 }
 0x384   : > { %2061 = vmatprep.subr.bf16.mxu1 %v2235_v20 }
 0x385   : > { %v1310_v49 = vpop.permute.xlu1 %1309 }
 0x38a   : > { %2052 = vmatmul.mubr.msk.bf16.vlgmr.msra.gmra.mxu1 %vm969_vm6, %v1198_v45 }
 0x38b   : > { %2062 = vmatpush3.bf16.xpose.msra.mxu1 %v1317_v48  ;;  %2063 = vmatprep.mubr.msk.bf16.mxu1 %vm2236_vm5, %v2235_v20 }
 0x38c   : > { %2073 = vmatprep.subr.bf16.mxu1 %v2235_v20 }
 0x392   : > { %2064 = vmatmul.mubr.msk.bf16.vlgmr.msra.gmra.mxu1 %vm969_vm6, %v1310_v49 }
 0x393   : > { %2077 = vmatprep.mubr.msk.bf16.mxu1 %vm2236_vm5, %v2235_v20 }
 0x43a   : > { %v1010_v50 = vpop.f32.mrf.mxu1 }
 0x43b   : > { %v1016_v52 = vmul.f32 0.35355338, %v1010_v50 }
 0x43c   : > { %v2029_v53 = vpop.f32.mrf.mxu1 }
 0x43d   : > { %v1023_v54 = vadd.f32 %v1943_v51, %v1016_v52 }
 0x43e   : > { %v1013_v55 = vpop.f32.mrf.mxu1 }
 0x43f   : > { %v1024_v56 = vsel %vm969_vm6, %v1023_v54, -inf }
 0x440   : > { %1025 = vmax.xlane.f32.xlu1 %v1024_v56  ;;  %v2030_v57 = vpop.f32.mrf.mxu1 }
 0x442   : > { %v1129_v58 = vpop.f32.mrf.mxu1 }
 0x443   : > { %v1135_v59 = vmul.f32 0.35355338, %v1129_v58 }
 0x444   : > { %v2041_v60 = vpop.f32.mrf.mxu1 }
 0x445   : > { %v1136_v61 = vadd.f32 %v1943_v51, %v1135_v59 }
 0x446   : > { %v1132_v62 = vpop.f32.mrf.mxu1 }
 0x447   : > { %v1137_v63 = vsel %vm969_vm6, %v1136_v61, -inf }
 0x448   : > { %1138 = vmax.xlane.f32.xlu0 %v1137_v63  ;;  %v2042_v0 = vpop.f32.mrf.mxu1 }
 0x44a   : > { %v1241_v1 = vpop.f32.mrf.mxu1 }
 0x44b   : > { %v1247_v2 = vmul.f32 0.35355338, %v1241_v1 }
 0x44c   : > { %v2053_v3 = vpop.f32.mrf.mxu1 }
 0x44d   : > { %v1248_v4 = vadd.f32 %v1943_v51, %v1247_v2 }
 0x44e   : > { %v1244_v5 = vpop.f32.mrf.mxu1 }
 0x44f   : > { %v1249_v6 = vsel %vm969_vm6, %v1248_v4, -inf  ;;  %v2163_v5 = vld [vmem:[%s2413_s26 + $0x8] sm:$0xff]  }
 0x450   : > { %1250 = vmax.xlane.f32.xlu1 %v1249_v6  ;;  %v2054_v7 = vpop.f32.mrf.mxu1  ;;  %2074 = vmatpush3.bf16.msra.mxu1 %v2163_v5  ;;  %v2164_v6 = vld [vmem:[%s2413_s26] sm:$0xff]  }
 0x451   : > { %2075 = vmatprep.subr.bf16.mxu1 %v2235_v20 }
 0x452   : > { %v1353_v8 = vpop.f32.mrf.mxu1 }
 0x453   : > { %v1359_v9 = vmul.f32 0.35355338, %v1353_v8 }
 0x454   : > { %v2065_v10 = vpop.f32.mrf.mxu1  ;;  %2076 = vmatpush3.bf16.msra.mxu1 %v2164_v6 }
 0x455   : > { %v1360_v11 = vadd.f32 %v1943_v51, %v1359_v9  ;;  %2089 = vmatprep.subr.bf16.mxu1 %v2235_v20 }
 0x456   : > { %v1356_v13 = vpop.f32.mrf.mxu1 }
 0x457   : > { %v1361_v14 = vsel %vm969_vm6, %v1360_v11, -inf }
 0x458   : > { %1362 = vmax.xlane.f32.xlu0 %v1361_v14  ;;  %v2066_v15 = vpop.f32.mrf.mxu1 }
 0x4c9   : > { %v1026_v16 = vpop.xlane.xlu1 %1025 }
 0x4ca   : > { %v1027_v17 = vsub.f32 %v1023_v54, %v1026_v16 }
 0x4cc   : > { %v1028_v18 = vmul.f32 1.442695, %v1027_v17 }
 0x4ce   : > { %2173 = vpow2.f32 %v1028_v18 }
 0x4d1   : > { %v1139_v19 = vpop.xlane.xlu0 %1138 }
 0x4d2   : > { %v1140_v21 = vsub.f32 %v1136_v61, %v1139_v19 }
 0x4d4   : > { %v1141_v22 = vmul.f32 1.442695, %v1140_v21 }
 0x4d6   : > { %2175 = vpow2.f32 %v1141_v22 }
 0x4d9   : > { %v1251_v32 = vpop.xlane.xlu1 %1250 }
 0x4da   : > { %v1252_v33 = vsub.f32 %v1248_v4, %v1251_v32 }
 0x4db   : > { %v2174_v23 = vpop.eup %2173 }
 0x4dc   : > { %v1030_v24 = vsel %vm969_vm6, %v2174_v23, 0.0  ;;  %v1253_v34 = vmul.f32 1.442695, %v1252_v33 }
 0x4dd   : > { %1031 = vadd.xlane.f32.xlu1 %v1030_v24  ;;  %v1951_v24 = vld [vmem:[%s2697_s8] ss:$0 sm:$0xff] }
 0x4e1   : > { %v1363_v25 = vpop.xlane.xlu0 %1362 }
 0x4e2   : > { %v1364_v26 = vsub.f32 %v1360_v11, %v1363_v25 }
 0x4e3   : > { %v2176_v27 = vpop.eup %2175 }
 0x4e4   : > { %v1365_v28 = vmul.f32 1.442695, %v1364_v26  ;;  %v1143_v29 = vsel %vm969_vm6, %v2176_v27, 0.0 }
 0x4e5   : > { %1144 = vadd.xlane.f32.xlu0 %v1143_v29 }
 0x4e6   : > { %2177 = vpow2.f32 %v1365_v28 }
 0x4e7   : > { %2179 = vpow2.f32 %v1253_v34 }
 0x4ee   : > { %1036 = vrot.lane.b32.xlu1 %v2495_v36, %s2244_s28 }
 0x4f3   : > { %v2178_v30 = vpop.eup %2177 }
 0x4f4   : > { %v1367_v31 = vsel %vm969_vm6, %v2178_v30, 0.0  ;;  %v2180_v35 = vpop.eup %2179 }
 0x4f5   : > { %1368 = vadd.xlane.f32.xlu0 %v1367_v31  ;;  %v1255_v37 = vsel %vm969_vm6, %v2180_v35, 0.0 }
 0x50b   : > { %1149 = vrot.lane.b32.xlu0 %v2495_v36, %s2245_s24 }
 0x512   : > { %1256 = vadd.xlane.f32.xlu1 %v1255_v37 }
 0x523   : > { %1261 = vrot.lane.b32.xlu1 %v2495_v36, %s2246_s17 }
 0x527   : > { %1373 = vrot.lane.b32.xlu1 %v2495_v36, %s2247_s14 }
 0x566   : > { %v1032_v38 = vpop.xlane.xlu1 %1031 }
 0x567   : > { %2181 = vrcp.f32 %v1032_v38  ;;  %v2165_v38 = vld [vmem:[%s2430_s2 + $0x8] sm:$0xff]  }
 0x56a   : > { %v1037_v39 = vpop.permute.xlu1 %1036 }
 0x56b   : > { %v1043_v40 = vsel %vm1041_vm7, %v1037_v39, 0  ;;  %v2166_v39 = vld [vmem:[%s2430_s2] sm:$0xff]  }
 0x56c   : > { %2032 = vmatpush3.bf16.msra.mxu0 %v1043_v40  ;;  %v2168_v40 = vld [vmem:[%s2444_s10 + $0x10] sm:$0xff]  }
 0x56d   : > { %2043 = vmatprep.subr.bf16.mxu0 %v2235_v20 }
 0x56e   : > { %v1145_v41 = vpop.xlane.xlu0 %1144 }
 0x56f   : > { %2183 = vrcp.f32 %v1145_v41 }
 0x574   : > { %v2182_v42 = vpop.eup %2181 }
 0x575   : > { %v1034_v43 = vmul.f32 %v2182_v42, %v2174_v23 }
 0x577   : > { %v1035_v44 = vpack.c.bf16 %v1034_v43, %v1034_v43 }
 0x579   : > { %2034 = vmatmul.mubr.msk.bf16.vlgmr.msra.gmra.mxu0 %vm969_vm6, %v1035_v44 }
 0x57a   : > { %2045 = vmatprep.mubr.msk.bf16.mxu0 %vm2236_vm5, %v2235_v20 }
 0x57c   : > { %v2184_v36 = vpop.eup %2183 }
 0x57d   : > { %v1147_v46 = vmul.f32 %v2184_v36, %v2176_v27  ;;  %v1955_v36 = vld [vmem:[%s2699_s16] ss:$0 sm:$0xff] }
 0x57e   : > { %v1369_v45 = vpop.xlane.xlu0 %1368 }
 0x57f   : > { %v1148_v49 = vpack.c.bf16 %v1147_v46, %v1147_v46  ;;  %v1956_v46 = vld [vmem:[%s2700_s15] ss:$0 sm:$0xff] }
 0x582   : > { %v1150_v47 = vpop.permute.xlu0 %1149 }
 0x583   : > { %v1155_v48 = vsel %vm1041_vm7, %v1150_v47, 0 }
 0x584   : > { %2044 = vmatpush3.bf16.msra.mxu0 %v1155_v48 }
 0x585   : > { %2055 = vmatprep.subr.bf16.mxu0 %v2235_v20 }
 0x587   : > { %2046 = vmatmul.mubr.msk.bf16.vlgmr.msra.gmra.mxu0 %vm969_vm6, %v1148_v49 }
 0x588   : > { %2057 = vmatprep.mubr.msk.bf16.mxu0 %vm2236_vm5, %v2235_v20 }
 0x59b   : > { %v1257_v50 = vpop.xlane.xlu1 %1256 }
 0x59c   : > { %2185 = vrcp.f32 %v1257_v50  ;;  %v2169_v50 = vld [vmem:[%s2444_s10 + $0x8] sm:$0xff]  }
 0x59d   : > { %2187 = vrcp.f32 %v1369_v45 }
 0x59f   : > { %v1262_v51 = vpop.permute.xlu1 %1261 }
 0x5a0   : > { %v1267_v52 = vsel %vm1041_vm7, %v1262_v51, 0  ;;  %v2170_v51 = vld [vmem:[%s2444_s10] sm:$0xff]  }
 0x5a1   : > { %2056 = vmatpush3.bf16.msra.mxu0 %v1267_v52  ;;  %v1957_v52 = vld [vmem:[%s776_s23] ss:$0 sm:$0xff] }
 0x5a2   : > { %2067 = vmatprep.subr.bf16.mxu0 %v2235_v20 }
 0x5a3   : > { %v1374_v55 = vpop.permute.xlu1 %1373 }
 0x5a4   : > { %v1379_v58 = vsel %vm1041_vm7, %v1374_v55, 0 }
 0x5a9   : > { %v2186_v53 = vpop.eup %2185 }
 0x5aa   : > { %v1259_v54 = vmul.f32 %v2186_v53, %v2180_v35  ;;  %v2188_v57 = vpop.eup %2187 }
 0x5ab   : > { %v1371_v59 = vmul.f32 %v2188_v57, %v2178_v30 }
 0x5ac   : > { %v1260_v56 = vpack.c.bf16 %v1259_v54, %v1259_v54 }
 0x5ad   : > { %v1372_v60 = vpack.c.bf16 %v1371_v59, %v1371_v59 }
 0x5ae   : > { %2058 = vmatmul.mubr.msk.bf16.vlgmr.msra.gmra.mxu0 %vm969_vm6, %v1260_v56 }
 0x5af   : > { %2068 = vmatpush3.bf16.msra.mxu0 %v1379_v58  ;;  %2069 = vmatprep.mubr.msk.bf16.mxu0 %vm2236_vm5, %v2235_v20 }
 0x5b0   : > { %2081 = vmatprep.subr.bf16.mxu0 %v2235_v20 }
 0x5b6   : > { %2070 = vmatmul.mubr.msk.bf16.vlgmr.msra.gmra.mxu0 %vm969_vm6, %v1372_v60 }
 0x5b7   : > { %2085 = vmatprep.mubr.msk.bf16.mxu0 %vm2236_vm5, %v2235_v20  ;;  %2082 = vmatpush3.bf16.msra.mxu0 %v2165_v38 }
 0x5b8   : > { %2083 = vmatprep.subr.bf16.mxu0 %v2235_v20 }
 0x5bb   : > { %2084 = vmatpush3.bf16.msra.mxu0 %v2166_v39 }
 0x639   : > { %v1079_v61 = vpop.f32.mrf.mxu0 }
 0x63b   : > { %v2035_v62 = vpop.f32.mrf.mxu0 }
 0x63d   : > { %v1082_v63 = vpop.f32.mrf.mxu0 }
 0x63f   : > { %v2036_v0 = vpop.f32.mrf.mxu0 }
 0x647   : > { %v1191_v1 = vpop.f32.mrf.mxu0 }
 0x648   : > { %1422 = vrot.lane.b32.xlu0 %v1191_v1, %s2248_s18 }
 0x649   : > { %v2047_v2 = vpop.f32.mrf.mxu0 }
 0x64b   : > { %v1194_v3 = vpop.f32.mrf.mxu0 }
 0x64d   : > { %v2048_v4 = vpop.f32.mrf.mxu0 }
 0x66e   : > { %v1303_v7 = vpop.f32.mrf.mxu0 }
 0x66f   : > { %1426 = vrot.lane.b32.xlu1 %v1303_v7, %s2249_s27 }
 0x670   : > { %v2059_v8 = vpop.f32.mrf.mxu0 }
 0x672   : > { %v1306_v9 = vpop.f32.mrf.mxu0 }
 0x674   : > { %v2060_v10 = vpop.f32.mrf.mxu0 }
 0x676   : > { %v1415_v11 = vpop.f32.mrf.mxu0 }
 0x677   : > { %1430 = vrot.lane.b32.xlu0 %v1415_v11, %s2250_s22 }
 0x678   : > { %v2071_v13 = vpop.f32.mrf.mxu0 }
 0x67a   : > { %v1418_v14 = vpop.f32.mrf.mxu0 }
 0x67c   : > { %v2072_v15 = vpop.f32.mrf.mxu0 }
 0x6ba   : > { %v1423_v16 = vpop.permute.xlu0 %1422 }
 0x6bb   : > { %v1433_v18 = vsel %vm969_vm6, %v1079_v61, %v1423_v16 }
 0x6e1   : > { %v1427_v17 = vpop.permute.xlu1 %1426 }
 0x6e2   : > { %v1435_v19 = vsel %vm1434_vm8, %v1433_v18, %v1427_v17 }
 0x6e9   : > { %v1431_v21 = vpop.permute.xlu0 %1430 }
 0x6ea   : > { %v1437_v22 = vsel %vm1436_vm9, %v1435_v19, %v1431_v21 }
 0x6eb   : > { %v1438_v23 = vpack.c.bf16 %v1437_v22, %v1437_v22 }
 0x6ed   : > { %2078 = vmatmul.mubr.msk.bf16.vlgmr.msra.gmra.mxu1 %vm868_vm4, %v1438_v23 }
 0x6ee   : > { %2097 = vmatprep.mubr.msk.bf16.mxu1 %vm2236_vm5, %v2235_v20 }
 0x7ad   : > { %v1499_v25 = vpop.f32.mrf.mxu1 }
 0x7ae   : > { %v1500_v26 = vadd.f32 %v1951_v24, %v1499_v25 }
 0x7af   : > { %v2079_v27 = vpop.f32.mrf.mxu1 }
 0x7b0   : > { %v1505_v28 = vadd.f32 %v1500_v26, %v2461_v12  ;;  %v2167_v12 = vld [vmem:[%s2444_s10 + $0x18] sm:$0xff]   ;;  %s2702_s10 = sld [smem:[#allocation3_spill]] }
 0x7b1   : > { %v1502_v29 = vpop.f32.mrf.mxu1  ;;  %2090 = vmatpush3.bf16.msra.mxu1 %v2167_v12 }
 0x7b2   : > { %v1508_v30 = vsel %vm868_vm4, %v1505_v28, 0.0  ;;  %2091 = vmatprep.subr.bf16.mxu1 %v2235_v20 }
 0x7b3   : > { %1509 = vadd.xlane.f32.xlu1 %v1508_v30  ;;  %v2080_v31 = vpop.f32.mrf.mxu1 }
 0x7b5   : > { %2092 = vmatpush3.bf16.msra.mxu1 %v2168_v40 }
 0x7b6   : > { %2093 = vmatprep.subr.bf16.mxu1 %v2235_v20  ;;  %p1967_p8 = scmp.ne.s32.totalorder %s2702_s10, 1 }
 0x7b7   : > { %s2703_s23 = sld [smem:[#allocation19_spill]] (!%p1967_p8) }
 0x7b8   : > { %s2704_s22 = sld [smem:[#allocation20_spill]] (!%p1967_p8) }
 0x7b9   : > { %2094 = vmatpush3.bf16.msra.mxu1 %v2169_v50 }
 0x7ba   : > { %2095 = vmatprep.subr.bf16.mxu1 %v2235_v20  ;;  %v1961_v20 = vld [vmem:[%s784_s9] ss:$0 sm:$0xff] }
 0x7bd   : > { %2096 = vmatpush3.bf16.msra.mxu1 %v2170_v51 }
 0x83c   : > { %v1510_v32 = vpop.xlane.xlu1 %1509 }
 0x83d   : > { %v1511_v33 = vmul.f32 0.03125, %v1510_v32 }
 0x83f   : > { %v1512_v34 = vsub.f32 %v1505_v28, %v1511_v33 }
 0x841   : > { %v1513_v35 = vmul.f32 %v1512_v34, %v1512_v34 }
 0x843   : > { %v1514_v37 = vsel %vm868_vm4, %v1513_v35, 0.0 }
 0x844   : > { %1515 = vadd.xlane.f32.xlu0 %v1514_v37 }
 0x8cd   : > { %v1516_v41 = vpop.xlane.xlu0 %1515 }
 0x8ce   : > { %v1517_v42 = vmul.f32 0.03125, %v1516_v41 }
 0x8d0   : > { %v1518_v43 = vadd.f32 1e-05, %v1517_v42 }
 0x8d2   : > { %2189 = vrsqrt.f32 %v1518_v43 }
 0x8df   : > { %v2190_v44 = vpop.eup %2189 }
 0x8e0   : > { %v1520_v45 = vmul.f32 %v2190_v44, %v1512_v34 }
 0x8e2   : > { %v1527_v47 = vmul.f32 %v1955_v36, %v1520_v45 }
 0x8e4   : > { %v1534_v48 = vadd.f32 %v1956_v46, %v1527_v47 }
 0x8e6   : > { %v1535_v49 = vpack.c.bf16 %v1534_v48, %v1534_v48 }
 0x8e8   : > { %2086 = vmatmul.mubr.msk.bf16.vlgmr.msra.gmra.mxu0 %vm868_vm4, %v1535_v49 }
 0x9a8   : > { %v1596_v53 = vpop.f32.mrf.mxu0 }
 0x9a9   : > { %v1597_v54 = vadd.f32 %v1957_v52, %v1596_v53 }
 0x9aa   : > { %v2087_v55 = vpop.f32.mrf.mxu0 }
 0x9ab   : > { %v1602_v56 = vmax.f32 %v1597_v54, 0.0 }
 0x9ac   : > { %v1599_v57 = vpop.f32.mrf.mxu0 }
 0x9ad   : > { %v1603_v58 = vpack.c.bf16 %v1602_v56, %v1602_v56 }
 0x9ae   : > { %v2088_v59 = vpop.f32.mrf.mxu0 }
 0x9af   : > { %2098 = vmatmul.mubr.msk.bf16.vlgmr.msra.gmra.mxu1 %vm1643_vm10, %v1603_v58 }
 0xa6f   : > { %v1681_v60 = vpop.f32.mrf.mxu1 }
 0xa70   : > { %v1682_v61 = vadd.f32 %v1961_v20, %v1681_v60 }
 0xa71   : > { %v2099_v62 = vpop.f32.mrf.mxu1  ;;  %1692 = sbr.rel (%p1967_p8) target bundleno = 2987 (0xbab), region = 100 }
 0xa72   : > { %v1687_v63 = vadd.f32 %v1682_v61, %v1505_v28 }
 0xa73   : > { %v1684_v0 = vpop.f32.mrf.mxu1 }
 0xa74   : > { %1688 = vst.msk [vmem:[#allocation2] sm:$0xff] %vm868_vm4, %v1687_v63 }
 0xa75   : > { %v2100_v1 = vpop.f32.mrf.mxu1 }
 0xa76   : > { %v1695_v2 = vsel %vm868_vm4, %v1687_v63, 0.0  ;;  %v1968_v13 = vld [vmem:[%s2703_s23] ss:$0 sm:$0xff] }
 0xa77   : > { %1696 = vadd.xlane.f32.xlu0 %v1695_v2  ;;  %v1969_v15 = vld [vmem:[%s2704_s22] ss:$0 sm:$0xff] }
 0xb00   : > { %v1697_v3 = vpop.xlane.xlu0 %1696 }
 0xb01   : > { %v1698_v4 = vmul.f32 0.03125, %v1697_v3 }
 0xb03   : > { %v1699_v5 = vsub.f32 %v1687_v63, %v1698_v4 }
 0xb05   : > { %v1700_v6 = vmul.f32 %v1699_v5, %v1699_v5 }
 0xb07   : > { %v1701_v7 = vsel %vm868_vm4, %v1700_v6, 0.0 }
 0xb08   : > { %1702 = vadd.xlane.f32.xlu0 %v1701_v7 }
 0xb91   : > { %v1703_v8 = vpop.xlane.xlu0 %1702 }
 0xb92   : > { %v1704_v9 = vmul.f32 0.03125, %v1703_v8 }
 0xb94   : > { %v1705_v10 = vadd.f32 1e-05, %v1704_v9 }
 0xb96   : > { %2191 = vrsqrt.f32 %v1705_v10 }
 0xba3   : > { %v2192_v11 = vpop.eup %2191 }
 0xba4   : > { %v1707_v14 = vmul.f32 %v2192_v11, %v1699_v5 }
 0xba6   : > { %v1714_v16 = vmul.f32 %v1968_v13, %v1707_v14 }
 0xba8   : > { %v1721_v17 = vadd.f32 %v1969_v15, %v1714_v16 }
 0xbaa   : > { %1722 = vst.msk [vmem:[%s2449_s6] sm:$0xff] %vm868_vm4, %v1721_v17 }
 0xbab PF: > { %s2705_s26 = sld [smem:[#allocation6_spill]] }
 0xbac   : > { %s2706_s27 = sld [smem:[#allocation4_spill]] }
 0xbad   : > { %s2707_s28 = sld [smem:[#allocation5_spill]] }
 0xbae   : > { %s2708_s29 = sld [smem:[#allocation7_spill]] }
 0xbaf   : > { %s2709_s30 = sld [smem:[#allocation8_spill]] }
 0xbb1   : > { %s28_s0 = sadd.s32 1, %s2705_s26  }
 0xbb2   : > { %p25_p9 = scmp.ge.s32.totalorder %s28_s0, 6  }
 0xbb4   :  { %27 = sbr.rel (!%p25_p9) target bundleno = 14 (0xe), region = 169 }

</bundles_post_ra>
